<compile_context>
chip_gen: v6e
topology: v6e:2x2x1
jax: 0.10.0
libtpu: 0.0.40
codegen_flags: <defaults>
</compile_context>

<pallas_src>
import functools
from typing import NamedTuple

import jax
import jax.numpy as jnp
from jax.experimental import pallas as pl
from jax.experimental.pallas import tpu as pltpu


# ---------------------------------------------------------------------------
# Kernels: tiled (rows x K) matmul + bias, accumulating into the f32 output
# ---------------------------------------------------------------------------
def _link_kernel_resident(a_ref, w_ref, b_ref, o_ref, *, tk):
    """W is fully VMEM-resident; slice the current K tile in-kernel."""
    k = pl.program_id(1)

    @pl.when(k == 0)
    def _():
        o_ref[...] = jnp.broadcast_to(b_ref[...], o_ref.shape)

    start = pl.multiple_of(k * tk, 128)
    a = a_ref[...].astype(jnp.float32)          # bf16 stream -> exact f32
    o_ref[...] += jnp.dot(a, w_ref[pl.ds(start, tk), :],
                          preferred_element_type=jnp.float32)


def _link_kernel_streamed(a_ref, w_ref, b_ref, o_ref):
    """Fallback: W streamed tile-by-tile from HBM (very large num_nodes)."""
    k = pl.program_id(1)

    @pl.when(k == 0)
    def _():
        o_ref[...] = jnp.broadcast_to(b_ref[...], o_ref.shape)

    a = a_ref[...].astype(jnp.float32)
    o_ref[...] += jnp.dot(a, w_ref[...], preferred_element_type=jnp.float32)


# ---------------------------------------------------------------------------
# Helpers / static config
# ---------------------------------------------------------------------------
def _round_up(x, m):
    return (x + m - 1) // m * m


def _cdiv(a, b):
    return (a + b - 1) // b


def _tpu_params():
    """(vmem capacity bytes, number of TensorCores sharing the grid)."""
    vmem_cap = 64 * 1024 * 1024          # v7x-safe fallback
    n_tc = 1
    try:
        vmem_cap = int(pltpu.get_tpu_info().vmem_capacity_bytes)
    except Exception:
        pass
    try:
        kind = jax.devices()[0].device_kind.lower()
        if ("v7" in kind) or ("v4" in kind) or ("v5p" in kind):
            n_tc = 2                     # megacore / 2-TC chips
    except Exception:
        pass
    return vmem_cap, n_tc


def _pick_k_tile(num_nodes):
    """Kp = round_up(num_nodes, 128); tk = largest 128-multiple <=512 dividing Kp."""
    Kp = _round_up(max(num_nodes, 1), 128)
    tk = 128
    for cand in (512, 384, 256, 128):
        if Kp % cand == 0:
            tk = cand
            break
    return Kp, tk


def _pick_row_block(np_rows, n_tc):
    """Row tile up to 1024.  Only split for megacore on 2-TC chips, keeping
    the number of row blocks even and balanced."""
    br = min(1024, np_rows)
    if n_tc > 1 and np_rows > 8:
        n_blocks = _cdiv(np_rows, br)
        if n_blocks % 2 == 1:
            n_blocks += 1
        br = _round_up(_cdiv(np_rows, n_blocks), 8)
    return max(8, min(br, np_rows))


class _LinkConfig(NamedTuple):
    n_rows: int
    num_nodes: int
    out_channels: int
    Np: int
    Kp: int
    Cp: int
    br: int
    tk: int
    use_resident: bool
    vmem_limit: int


def _make_config(n_rows, num_nodes, out_channels):
    vmem_cap, n_tc = _tpu_params()
    Kp, tk = _pick_k_tile(num_nodes)
    Cp = _round_up(max(out_channels, 1), 128)   # lane-dense output features
    Np = _round_up(max(n_rows, 1), 8)           # sublane-aligned rows
    br = _pick_row_block(Np, n_tc)

    a_tile = br * tk * 2                        # bf16 A tile, per buffer
    out_tile = br * Cp * 4
    bias_tile = 8 * Cp * 4
    w_full = Kp * Cp * 4
    w_tile = tk * Cp * 4

    # Conservative: assume double-buffered allocation even for resident W.
    resident_need = 2 * (a_tile + bias_tile + out_tile) + 2 * w_full
    use_resident = resident_need <= int(0.70 * vmem_cap)
    need = resident_need if use_resident else 2 * (a_tile + w_tile + bias_tile
                                                   + out_tile)
    vmem_limit = int(min(max(int(need * 1.3) + (2 << 20), 16 << 20),
                         int(vmem_cap * 0.9)))
    return _LinkConfig(n_rows, num_nodes, out_channels, Np, Kp, Cp, br, tk,
                       use_resident, vmem_limit)


# ---------------------------------------------------------------------------
# Forward
# ---------------------------------------------------------------------------
@functools.partial(jax.jit, static_argnums=(3,))
def _link_forward_impl(edge_index, w, b, cfg: _LinkConfig):
    Np, Kp, Cp, br, tk = cfg.Np, cfg.Kp, cfg.Cp, cfg.br, cfg.tk

    # ---- dense adjacency (JAX scatter-add glue; duplicates summed) --------
    # bf16 is exact for small integer edge counts; halves HBM traffic.
    row = edge_index[0]
    col = edge_index[1]
    row = row - jnp.min(row)                    # mirrors `row - row.min()`
    A = jnp.zeros((Np, Kp), jnp.bfloat16).at[row, col].add(
        jnp.asarray(1.0, jnp.bfloat16))

    # ---- zero-padded f32 parameters (padding does not change the result) --
    w_p = jnp.zeros((Kp, Cp), jnp.float32).at[
        :cfg.num_nodes, :cfg.out_channels].set(w.astype(jnp.float32))
    b_p = jnp.zeros((1, Cp), jnp.float32).at[
        0, :cfg.out_channels].set(b.astype(jnp.float32))

    n_row_tiles = _cdiv(Np, br)
    n_k_tiles = Kp // tk
    grid = (n_row_tiles, n_k_tiles)

    if cfg.use_resident:
        kernel = functools.partial(_link_kernel_resident, tk=tk)
        w_spec = pl.BlockSpec((Kp, Cp), lambda i, k: (0, 0))   # VMEM-resident
        w_hbm_bytes = Kp * Cp * 4
    else:
        kernel = _link_kernel_streamed
        w_spec = pl.BlockSpec((tk, Cp), lambda i, k: (k, 0))   # restreamed
        w_hbm_bytes = Kp * Cp * 4 * n_row_tiles

    out_p = pl.pallas_call(
        kernel,
        out_shape=jax.ShapeDtypeStruct((Np, Cp), jnp.float32),
        grid=grid,
        in_specs=[
            pl.BlockSpec((br, tk), lambda i, k: (i, k)),       # bf16 A tile
            w_spec,                                            # f32 W
            pl.BlockSpec((1, Cp), lambda i, k: (0, 0)),        # bias
        ],
        out_specs=pl.BlockSpec((br, Cp), lambda i, k: (i, 0)),
        compiler_params=pltpu.CompilerParams(
            dimension_semantics=("parallel", "arbitrary"),
            vmem_limit_bytes=cfg.vmem_limit),
        cost_estimate=pl.CostEstimate(
            flops=2 * Np * Kp * Cp,
            transcendentals=0,
            bytes_accessed=Np * Kp * 2 + w_hbm_bytes + Cp * 4 + Np * Cp * 4),
    )(A, w_p, b_p)

    return out_p[:cfg.n_rows, :cfg.out_channels].astype(w.dtype)


def link_forward(edge_index, w, b, *, n_rows):
    """edge_index: (2, E) int32; w: (num_nodes, out_channels); b: (out_channels,)
    n_rows: data.num_nodes (number of rows of the adjacency matrix)."""
    num_nodes, out_channels = w.shape
    cfg = _make_config(int(n_rows), int(num_nodes), int(out_channels))
    return _link_forward_impl(edge_index, w, b, cfg)


def link_forward_ref(edge_index, w, b, n_rows):
    """Pure-JAX f32 reference (dense equivalent of the torch sparse Linear)."""
    num_nodes = w.shape[0]
    row = edge_index[0] - jnp.min(edge_index[0])
    col = edge_index[1]
    A = jnp.zeros((n_rows, num_nodes), w.dtype).at[row, col].add(1.0)
    return A @ w + b


# ---------------------------------------------------------------------------
if __name__ == "__main__":
    key = jax.random.PRNGKey(0)

    num_nodes = 64        # N == self.num_nodes for the test graph
    out_channels = 16
    n_edges = 256

    k_r, k_c, k_w, k_b = jax.random.split(key, 4)
    e_row = jax.random.randint(k_r, (n_edges,), 0, num_nodes, jnp.int32)
    e_col = jax.random.randint(k_c, (n_edges,), 0, num_nodes, jnp.int32)
    edge_index = jnp.stack([e_row, e_col])

    bound = 1.0 / (num_nodes ** 0.5)
    w = jax.random.uniform(k_w, (num_nodes, out_channels), jnp.float32,
                           -bound, bound)   # transpose of torch W.weight
    b = jax.random.uniform(k_b, (out_channels,), jnp.float32, -bound, bound)

    out = link_forward(edge_index, w, b, n_rows=num_nodes)
    out = jax.block_until_ready(out)

    ref = link_forward_ref(edge_index, w, b, num_nodes)
    assert out.shape == (num_nodes, out_channels)
    assert jnp.allclose(out, ref, atol=1e-4, rtol=1e-4)

    print("KERNEL_OK")
</pallas_src>

<mosaic_0001>
module attributes {stable_mosaic.version = 11 : i64} {
  func.func @_link_kernel_resident(%arg0: i32, %arg1: i32, %arg2: memref<64x128xbf16, #tpu.memory_space<vmem>>, %arg3: memref<128x128xf32, #tpu.memory_space<vmem>>, %arg4: memref<1x128xf32, #tpu.memory_space<vmem>>, %arg5: memref<64x128xf32, #tpu.memory_space<vmem>>) attributes {dimension_semantics = [#tpu.dimension_semantics<parallel>, #tpu.dimension_semantics<arbitrary>], iteration_bounds = array<i64: 1, 1>, scalar_prefetch = 0 : i64, scratch_operands = 0 : i64, tpu.core_type = #tpu.core_type<tc>, window_params = [{transform_indices = @transform_0, window_bounds = array<i64: 64, 128>}, {pipeline_mode = #tpu.pipeline_mode<synchronous>, transform_indices = @transform_1, window_bounds = array<i64: 128, 128>}, {pipeline_mode = #tpu.pipeline_mode<synchronous>, transform_indices = @transform_2, window_bounds = array<i64: 1, 128>}, {transform_indices = @transform_3, window_bounds = array<i64: 64, 128>}]} {
    %c0_i32 = arith.constant 0 : i32
    %0 = arith.cmpi eq, %arg1, %c0_i32 : i32
    %1 = arith.extui %0 : i1 to i32
    %c0_i32_0 = arith.constant 0 : i32
    %2 = arith.cmpi ne, %1, %c0_i32_0 : i32
    scf.if %2 {
      %c0_7 = arith.constant 0 : index
      %c0_8 = arith.constant 0 : index
      %13 = vector.load %arg4[%c0_7, %c0_8] : memref<1x128xf32, #tpu.memory_space<vmem>>, vector<1x128xf32>
      %14 = vector.shape_cast %13 : vector<1x128xf32> to vector<1x128xf32>
      %15 = vector.broadcast %14 : vector<1x128xf32> to vector<64x128xf32>
      %c0_9 = arith.constant 0 : index
      %c0_10 = arith.constant 0 : index
      %16 = vector.load %arg5[%c0_9, %c0_10] : memref<64x128xf32, #tpu.memory_space<vmem>>, vector<64x128xf32>
      tpu.vector_store %arg5[%c0_9, %c0_10], %15 {strides = array<i32>} : memref<64x128xf32, #tpu.memory_space<vmem>>, vector<64x128xf32>,
    } else {
    }
    %c128_i32 = arith.constant 128 : i32
    %3 = arith.muli %arg1, %c128_i32 : i32
    %4 = tpu.assume_multiple %3, 128 : i32
    %c0 = arith.constant 0 : index
    %c0_1 = arith.constant 0 : index
    %5 = vector.load %arg2[%c0, %c0_1] : memref<64x128xbf16, #tpu.memory_space<vmem>>, vector<64x128xbf16>
    %6 = arith.extf %5 : vector<64x128xbf16> to vector<64x128xf32>
    %c0_2 = arith.constant 0 : index
    %c0_3 = arith.constant 0 : index
    %7 = vector.load %arg5[%c0_2, %c0_3] : memref<64x128xf32, #tpu.memory_space<vmem>>, vector<64x128xf32>
    %8 = arith.index_cast %4 : i32 to index
    %c0_4 = arith.constant 0 : index
    %9 = vector.load %arg3[%8, %c0_4] : memref<128x128xf32, #tpu.memory_space<vmem>>, vector<128x128xf32>
    %cst = arith.constant dense<0.000000e+00> : vector<64x128xf32>
    %10 = tpu.matmul %6, %9, %cst {dimension_numbers = #tpu.dot_dimension_numbers<[1], [0], [0], [1], [0, 0, 1, 1], [], []>} : vector<64x128xf32>, vector<128x128xf32>, vector<64x128xf32> -> vector<64x128xf32>
    %11 = arith.addf %7, %10 : vector<64x128xf32>
    %c0_5 = arith.constant 0 : index
    %c0_6 = arith.constant 0 : index
    %12 = vector.load %arg5[%c0_5, %c0_6] : memref<64x128xf32, #tpu.memory_space<vmem>>, vector<64x128xf32>
    tpu.vector_store %arg5[%c0_5, %c0_6], %11 {strides = array<i32>} : memref<64x128xf32, #tpu.memory_space<vmem>>, vector<64x128xf32>,
    return
  }
  func.func @transform_0(%arg0: i32, %arg1: i32) -> (i32, i32) {
    %c0_i32 = arith.constant 0 : i32
    return %arg0, %arg1 : i32, i32
  }
  func.func @transform_1(%arg0: i32, %arg1: i32) -> (i32, i32) {
    %c0_i32 = arith.constant 0 : i32
    %c0_i32_0 = arith.constant 0 : i32
    %c0_i32_1 = arith.constant 0 : i32
    return %c0_i32, %c0_i32_0 : i32, i32
  }
  func.func @transform_2(%arg0: i32, %arg1: i32) -> (i32, i32) {
    %c0_i32 = arith.constant 0 : i32
    %c0_i32_0 = arith.constant 0 : i32
    %c0_i32_1 = arith.constant 0 : i32
    return %c0_i32, %c0_i32_0 : i32, i32
  }
  func.func @transform_3(%arg0: i32, %arg1: i32) -> (i32, i32) {
    %c0_i32 = arith.constant 0 : i32
    %c0_i32_0 = arith.constant 0 : i32
    return %arg0, %c0_i32 : i32, i32
  }
}

</mosaic_0001>

<bundles_post_ra>
// kernel: _link_forward_impl.1
= control target key start
LH: loop header
LB: loop body
LE: loop exit
PB: predicated region body
PF: predicated region fallthrough
CT: control target
= control target key end

     0   :  { %s427_s1 = inlined_call_operand.vmem [shape: f32[128,128], index: 1, kind: input, shape index: {}]   ;;  %s428_s0 = inlined_call_operand.vmem [shape: bf16[64,128], index: 0, kind: input, shape index: {}]   ;;  %s429_s2 = inlined_call_operand.vmem [shape: f32[1,128], index: 2, kind: input, shape index: {}]   ;;  %s430_s3 = inlined_call_operand.vmem [shape: f32[64,128], index: 3, kind: output, shape index: {}]  }
   0x1   :  { %v74_v0 = vld [vmem:[%s427_s1 + $0x78] sm:$0xff]  ;;  %v73_v1 = vld [vmem:[%s427_s1 + $0x70] sm:$0xff]  ;;  %v72_v2 = vld [vmem:[%s427_s1 + $0x68] sm:$0xff] }
   0x2   :  { %244 = vmatprep.subr.mxu0 %v74_v0  ;;  %288 = vmatprep.subr.mxu1 %v74_v0  ;;  %v71_v3 = vld [vmem:[%s427_s1 + $0x60] sm:$0xff]  ;;  %v70_v4 = vld [vmem:[%s427_s1 + $0x58] sm:$0xff]  ;;  %v69_v5 = vld [vmem:[%s427_s1 + $0x50] sm:$0xff] }
   0x3   :  { %245 = vmatpush3.msra.mxu0 %v74_v0  ;;  %304 = vmatpush3.msra.mxu1 %v74_v0  ;;  %v68_v6 = vld [vmem:[%s427_s1 + $0x48] sm:$0xff]  ;;  %v67_v7 = vld [vmem:[%s427_s1 + $0x40] sm:$0xff]  ;;  %v66_v8 = vld [vmem:[%s427_s1 + $0x38] sm:$0xff] }
   0x4   :  { %246 = vmatprep.subr.mxu0 %v73_v1  ;;  %289 = vmatprep.subr.mxu1 %v73_v1  ;;  %v65_v9 = vld [vmem:[%s427_s1 + $0x30] sm:$0xff]  ;;  %v64_v10 = vld [vmem:[%s427_s1 + $0x28] sm:$0xff]  ;;  %v63_v11 = vld [vmem:[%s427_s1 + $0x20] sm:$0xff] }
   0x5   :  { %247 = vmatpush3.msra.mxu0 %v73_v1  ;;  %305 = vmatpush3.msra.mxu1 %v73_v1  ;;  %v62_v12 = vld [vmem:[%s427_s1 + $0x18] sm:$0xff]  ;;  %v61_v13 = vld [vmem:[%s427_s1 + $0x10] sm:$0xff]  ;;  %v60_v14 = vld [vmem:[%s427_s1 + $0x8] sm:$0xff] }
   0x6   :  { %248 = vmatprep.subr.mxu0 %v72_v2  ;;  %290 = vmatprep.subr.mxu1 %v72_v2  ;;  %v202_v15 = vld [vmem:[%s428_s0] sm:$0xff]   ;;  %v218_v16 = vld [vmem:[%s428_s0 + $0x10] sm:$0xff]   ;;  %v217_v18 = vld [vmem:[%s428_s0 + $0x8] sm:$0xff]  }
   0x7   :  { %249 = vmatpush3.msra.mxu0 %v72_v2  ;;  %306 = vmatpush3.msra.mxu1 %v72_v2  ;;  %v59_v17 = vld [vmem:[%s427_s1] sm:$0xff]  ;;  %v219_v19 = vld [vmem:[%s428_s0 + $0x18] sm:$0xff]   ;;  %v203_v20 = vunpack.c.l.bf16 %v202_v15  ;;  %v211_v21 = vunpack.c.l.bf16 %v218_v16  ;;  %v204_v22 = vunpack.c.h.bf16 %v202_v15  ;;  %v212_v23 = vunpack.c.h.bf16 %v218_v16 }
   0x8   :  { %250 = vmatprep.subr.mxu0 %v71_v3  ;;  %291 = vmatprep.subr.mxu1 %v71_v3  ;;  %v207_v24 = vunpack.c.l.bf16 %v217_v18  ;;  %v215_v25 = vunpack.c.l.bf16 %v219_v19  ;;  %v208_v26 = vunpack.c.h.bf16 %v217_v18  ;;  %v216_v27 = vunpack.c.h.bf16 %v219_v19  ;;  %v200_v28 = vld [vmem:[%s429_s2] ss:$0 sm:$0xff] }
   0x9   :  { %251 = vmatpush3.msra.mxu0 %v71_v3  ;;  %307 = vmatpush3.msra.mxu1 %v71_v3 }
   0xa   :  { %252 = vmatprep.subr.mxu0 %v70_v4  ;;  %292 = vmatprep.subr.mxu1 %v70_v4 }
   0xb   :  { %253 = vmatpush3.msra.mxu0 %v70_v4  ;;  %308 = vmatpush3.msra.mxu1 %v70_v4 }
   0xc   :  { %254 = vmatprep.subr.mxu0 %v69_v5  ;;  %293 = vmatprep.subr.mxu1 %v69_v5 }
   0xd   :  { %255 = vmatpush3.msra.mxu0 %v69_v5  ;;  %309 = vmatpush3.msra.mxu1 %v69_v5 }
   0xe   :  { %256 = vmatprep.subr.mxu0 %v68_v6  ;;  %294 = vmatprep.subr.mxu1 %v68_v6 }
   0xf   :  { %257 = vmatpush3.msra.mxu0 %v68_v6  ;;  %310 = vmatpush3.msra.mxu1 %v68_v6 }
  0x10   :  { %258 = vmatprep.subr.mxu0 %v67_v7  ;;  %295 = vmatprep.subr.mxu1 %v67_v7 }
  0x11   :  { %259 = vmatpush3.msra.mxu0 %v67_v7  ;;  %311 = vmatpush3.msra.mxu1 %v67_v7 }
  0x12   :  { %260 = vmatprep.subr.mxu0 %v66_v8  ;;  %296 = vmatprep.subr.mxu1 %v66_v8 }
  0x13   :  { %261 = vmatpush3.msra.mxu0 %v66_v8  ;;  %312 = vmatpush3.msra.mxu1 %v66_v8 }
  0x14   :  { %262 = vmatprep.subr.mxu0 %v65_v9  ;;  %297 = vmatprep.subr.mxu1 %v65_v9 }
  0x15   :  { %263 = vmatpush3.msra.mxu0 %v65_v9  ;;  %313 = vmatpush3.msra.mxu1 %v65_v9 }
  0x16   :  { %264 = vmatprep.subr.mxu0 %v64_v10  ;;  %298 = vmatprep.subr.mxu1 %v64_v10 }
  0x17   :  { %265 = vmatpush3.msra.mxu0 %v64_v10  ;;  %314 = vmatpush3.msra.mxu1 %v64_v10 }
  0x18   :  { %266 = vmatprep.subr.mxu0 %v63_v11  ;;  %299 = vmatprep.subr.mxu1 %v63_v11 }
  0x19   :  { %267 = vmatpush3.msra.mxu0 %v63_v11  ;;  %315 = vmatpush3.msra.mxu1 %v63_v11 }
  0x1a   :  { %268 = vmatprep.subr.mxu0 %v62_v12  ;;  %300 = vmatprep.subr.mxu1 %v62_v12 }
  0x1b   :  { %269 = vmatpush3.msra.mxu0 %v62_v12  ;;  %316 = vmatpush3.msra.mxu1 %v62_v12 }
  0x1c   :  { %270 = vmatprep.subr.mxu0 %v61_v13  ;;  %301 = vmatprep.subr.mxu1 %v61_v13 }
  0x1d   :  { %271 = vmatpush3.msra.mxu0 %v61_v13  ;;  %317 = vmatpush3.msra.mxu1 %v61_v13 }
  0x1e   :  { %272 = vmatprep.subr.mxu0 %v60_v14  ;;  %302 = vmatprep.subr.mxu1 %v60_v14 }
  0x1f   :  { %273 = vmatpush3.msra.mxu0 %v60_v14  ;;  %318 = vmatpush3.msra.mxu1 %v60_v14 }
  0x20   :  { %274 = vmatprep.subr.mxu0 %v59_v17  ;;  %303 = vmatprep.subr.mxu1 %v59_v17 }
  0x21   :  { %275 = vmatpush3.msra.mxu0 %v59_v17  ;;  %319 = vmatpush3.msra.mxu1 %v59_v17 }
  0x22   :  { %276 = vmatprep.mubr.f32.mxu0 %v203_v20  ;;  %282 = vmatprep.mubr.f32.mxu1 %v211_v21 }
  0x23   :  { %277 = vmatmul.mubr.f32.vlgmr.msra.gmra.mxu0 %v204_v22  ;;  %283 = vmatmul.mubr.f32.vlgmr.msra.gmra.mxu1 %v212_v23 }
  0x24   :  { %279 = vmatprep.mubr.f32.mxu0 %v207_v24  ;;  %285 = vmatprep.mubr.f32.mxu1 %v215_v25 }
  0x27   :  { %280 = vmatmul.mubr.f32.gmra.mxu0 %v208_v26  ;;  %286 = vmatmul.mubr.f32.gmra.mxu1 %v216_v27 }
  0xe3   :  { %v278_v29 = vpop.f32.mrf.mxu0  ;;  %v284_v30 = vpop.f32.mrf.mxu1 }
  0xe4   :  { %v181_v31 = vadd.f32 %v278_v29, %v200_v28  ;;  %v185_v32 = vadd.f32 %v284_v30, %v200_v28 }
  0xe5   :  { %v141_v33 = vpop.f32.mrf.mxu0  ;;  %v161_v34 = vpop.f32.mrf.mxu1 }
  0xe6   :  { %189 = vst [vmem:[%s430_s3 + $0x8] sm:$0xff] %v181_v31  ;;  %193 = vst [vmem:[%s430_s3 + $0x28] sm:$0xff] %v185_v32  ;;  %v180_v35 = vadd.f32 %v200_v28, %v141_v33  ;;  %v184_v36 = vadd.f32 %v200_v28, %v161_v34 }
  0xe7   :  { %v281_v37 = vpop.f32.mrf.mxu0  ;;  %v287_v38 = vpop.f32.mrf.mxu1 }
  0xe8   :  { %188 = vst [vmem:[%s430_s3] sm:$0xff] %v180_v35  ;;  %192 = vst [vmem:[%s430_s3 + $0x20] sm:$0xff] %v184_v36  ;;  %v183_v39 = vadd.f32 %v281_v37, %v200_v28  ;;  %v187_v40 = vadd.f32 %v287_v38, %v200_v28 }
  0xe9   :  { %v151_v41 = vpop.f32.mrf.mxu0  ;;  %v171_v42 = vpop.f32.mrf.mxu1 }
  0xea   :  { %191 = vst [vmem:[%s430_s3 + $0x18] sm:$0xff] %v183_v39  ;;  %195 = vst [vmem:[%s430_s3 + $0x38] sm:$0xff] %v187_v40  ;;  %v182_v43 = vadd.f32 %v200_v28, %v151_v41  ;;  %v186_v44 = vadd.f32 %v200_v28, %v171_v42 }
  0xec   :  { %190 = vst [vmem:[%s430_s3 + $0x10] sm:$0xff] %v182_v43  ;;  %194 = vst [vmem:[%s430_s3 + $0x30] sm:$0xff] %v186_v44 }

</bundles_post_ra>
